<compile_context>
chip_gen: v5e
topology: v5e:2x2
jax: 0.10.0
libtpu: 0.0.40
codegen_flags: <defaults>
</compile_context>

<pallas_src>
import jax
import jax.numpy as jnp
from jax.experimental import pallas as pl
from jax.experimental.pallas import tpu as pltpu

N_IN = 4
H1, H2, H3 = 128, 256, 60
N_ACTIONS = 6
H3_PAD = 64    # 60 -> 64 lanes (full-array block, so (8,128) rule is satisfied)
OUT_PAD = 8    # 6  -> 8 lanes  (contiguous HBM chunk per row; only a cheap masked vst)

_MEGACORE_SPLIT_MIN = 2048      # only force >=2 grid steps when B is at least this big
_VMEM_BUDGET_BYTES = 48 << 20   # conservative cap: v7x has 64 MiB VMEM per TensorCore


def _mlp_kernel(x_ref,
                w1_ref, b1_ref,
                w2_ref, b2_ref,
                w3_ref, b3_ref,
                w4_ref, b4_ref,
                out_ref):
    """Fused 4-layer MLP forward for one batch tile. Weights are VMEM-resident."""
    # dense1: [TB,4] @ [4,128] f32 on the MXU. K=4 is near-free on the MXU and avoids
    # the per-column lane-broadcast chain (XLU/VALU) of an FMA formulation.
    h1 = jnp.dot(x_ref[...], w1_ref[...],
                 preferred_element_type=jnp.float32) + b1_ref[...]
    h1 = jnp.maximum(h1, 0.0)

    # dense2: [TB,128] @ [128,256] (bf16 MXU, f32 accumulate) + bias -> ReLU
    h2 = jnp.dot(h1.astype(jnp.bfloat16), w2_ref[...],
                 preferred_element_type=jnp.float32) + b2_ref[...]
    h2 = jnp.maximum(h2, 0.0)

    # dense3: [TB,256] @ [256,64] (60 real + 4 zero-padded columns) -> ReLU
    h3 = jnp.dot(h2.astype(jnp.bfloat16), w3_ref[...],
                 preferred_element_type=jnp.float32) + b3_ref[...]
    h3 = jnp.maximum(h3, 0.0)

    # out: [TB,64] @ [64,8] (6 real + 2 zero-padded columns), no activation.
    out = jnp.dot(h3.astype(jnp.bfloat16), w4_ref[...],
                  preferred_element_type=jnp.float32) + b4_ref[...]
    out_ref[...] = out


def _round_up(v, m):
    return (v + m - 1) // m * m


def _vmem_limit_bytes(tile_b):
    """Honest scoped-VMEM estimate for one batch tile (declared to the compiler)."""
    weights = (N_IN * H1 * 4 + H1 * 4            # w1/b1 (f32)
               + H1 * H2 * 2 + H2 * 4            # w2 (bf16) / b2 (f32)
               + H2 * H3_PAD * 2 + H3_PAD * 4    # w3 / b3
               + H3_PAD * OUT_PAD * 2 + OUT_PAD * 4)
    io = 2 * tile_b * N_IN * 4 + 2 * tile_b * OUT_PAD * 4        # double-buffered x / out
    acts_f32 = tile_b * (H1 + H2 + H3_PAD + OUT_PAD) * 4          # post-bias f32 activations
    acts_bf16 = tile_b * (H1 + H2 + H3_PAD) * 2                   # bf16 MXU-input copies
    temps_f32 = tile_b * (H1 + H2 + H3_PAD + OUT_PAD) * 4         # pre-ReLU / accumulator temps
    total = weights + io + acts_f32 + acts_bf16 + temps_f32
    return max(int(1.5 * total), 4 << 20)                         # 1.5x headroom, 4 MiB floor


def _choose_tile_b(B, tile_b):
    """Pick a batch tile: VMEM-safe on v7x, >=2 grid steps for megacore on big batches,
    and adaptive so an unlucky B (e.g. 4097) doesn't pad up to ~2x the rows."""
    tb_cap = max(8, _round_up(tile_b, 8))
    while _vmem_limit_bytes(tb_cap) > _VMEM_BUDGET_BYTES and tb_cap > 256:
        tb_cap = max(256, _round_up(tb_cap // 2, 8))
    min_tiles = 2 if B >= _MEGACORE_SPLIT_MIN else 1
    n_tiles = max(min_tiles, -(-B // tb_cap))
    return max(8, _round_up(-(-B // n_tiles), 8))


def init_params(key):
    """Deterministic init mimicking torch.nn.Linear default (uniform +-1/sqrt(fan_in))."""
    dims = [(N_IN, H1), (H1, H2), (H2, H3), (H3, N_ACTIONS)]
    params = {}
    keys = jax.random.split(key, 2 * len(dims))
    for i, (fan_in, fan_out) in enumerate(dims):
        bound = 1.0 / (fan_in ** 0.5)
        params[f"w{i + 1}"] = jax.random.uniform(
            keys[2 * i], (fan_in, fan_out), minval=-bound, maxval=bound, dtype=jnp.float32)
        params[f"b{i + 1}"] = jax.random.uniform(
            keys[2 * i + 1], (1, fan_out), minval=-bound, maxval=bound, dtype=jnp.float32)
    return params


def prepare_params_for_kernel(params):
    """Zero-pad the 60-/6-wide dims to 64/8 lanes and cast MXU weights to bf16.

    Padding is exact: padded w3/b3 columns are zero -> h3 pad lanes are relu(0)=0,
    so the padded w4 rows contribute nothing and the padded output columns are zero.
    """
    w3 = jnp.pad(params["w3"], ((0, 0), (0, H3_PAD - H3)))
    b3 = jnp.pad(params["b3"], ((0, 0), (0, H3_PAD - H3)))
    w4 = jnp.pad(params["w4"], ((0, H3_PAD - H3), (0, OUT_PAD - N_ACTIONS)))
    b4 = jnp.pad(params["b4"], ((0, 0), (0, OUT_PAD - N_ACTIONS)))
    return dict(
        w1=params["w1"].astype(jnp.float32),   # layer-1 kept f32 (K=4 MXU pass is ~free)
        b1=params["b1"].astype(jnp.float32),
        w2=params["w2"].astype(jnp.bfloat16),
        b2=params["b2"].astype(jnp.float32),
        w3=w3.astype(jnp.bfloat16),
        b3=b3.astype(jnp.float32),
        w4=w4.astype(jnp.bfloat16),
        b4=b4.astype(jnp.float32),
    )


def deep_q_network_forward_padded(x, kparams, *, tile_b=4096):
    """x: [B, 4] f32. Returns [B_pad, OUT_PAD] f32 (rows >= B and lanes >= 6 are zero).

    Preferred entry point for large batches: consumers should slice/fuse the
    [:B, :6] view themselves to avoid a separate HBM slice pass.
    """
    B = x.shape[0]
    tb = _choose_tile_b(B, tile_b)
    B_pad = _round_up(B, tb)
    if B_pad != B:
        x = jnp.pad(x, ((0, B_pad - B), (0, 0)))

    grid = (B_pad // tb,)

    in_specs = [
        pl.BlockSpec((tb, N_IN), lambda i: (i, 0)),           # x: tiled along batch
        pl.BlockSpec((N_IN, H1), lambda i: (0, 0)),           # w1 — VMEM-resident
        pl.BlockSpec((1, H1), lambda i: (0, 0)),              # b1
        pl.BlockSpec((H1, H2), lambda i: (0, 0)),             # w2
        pl.BlockSpec((1, H2), lambda i: (0, 0)),              # b2
        pl.BlockSpec((H2, H3_PAD), lambda i: (0, 0)),         # w3 (padded to 64)
        pl.BlockSpec((1, H3_PAD), lambda i: (0, 0)),          # b3 (padded)
        pl.BlockSpec((H3_PAD, OUT_PAD), lambda i: (0, 0)),    # w4 (padded to 64x8)
        pl.BlockSpec((1, OUT_PAD), lambda i: (0, 0)),         # b4 (padded)
    ]
    out_spec = pl.BlockSpec((tb, OUT_PAD), lambda i: (i, 0))

    return pl.pallas_call(
        _mlp_kernel,
        out_shape=jax.ShapeDtypeStruct((B_pad, OUT_PAD), jnp.float32),
        grid=grid,
        in_specs=in_specs,
        out_specs=out_spec,
        compiler_params=pltpu.CompilerParams(
            dimension_semantics=("parallel",),
            vmem_limit_bytes=_vmem_limit_bytes(tb)),
    )(x,
      kparams["w1"], kparams["b1"],
      kparams["w2"], kparams["b2"],
      kparams["w3"], kparams["b3"],
      kparams["w4"], kparams["b4"])


def deep_q_network_forward(x, kparams, *, tile_b=4096):
    """Convenience wrapper matching the PyTorch module output: [B, 6] float32."""
    B = x.shape[0]
    out_padded = deep_q_network_forward_padded(x, kparams, tile_b=tile_b)
    return out_padded[:B, :N_ACTIONS]


def reference_forward(x, params):
    """Pure-JAX f32 reference matching the PyTorch module semantics."""
    h = jnp.maximum(x @ params["w1"] + params["b1"], 0.0)
    h = jnp.maximum(h @ params["w2"] + params["b2"], 0.0)
    h = jnp.maximum(h @ params["w3"] + params["b3"], 0.0)
    return h @ params["w4"] + params["b4"]


if __name__ == "__main__":
    key = jax.random.PRNGKey(0)
    pkey, xkey = jax.random.split(key)
    params = init_params(pkey)
    kparams = prepare_params_for_kernel(params)

    B = 16  # small demo batch (kernel is built for large B via the batch grid)
    x = jax.random.normal(xkey, (B, N_IN), dtype=jnp.float32)

    out = jax.block_until_ready(deep_q_network_forward(x, kparams, tile_b=4096))
    ref = reference_forward(x, params)

    assert out.shape == (B, N_ACTIONS), out.shape
    # bf16 MXU inputs with f32 accumulation -> allow bf16-level tolerance vs the f32 reference.
    assert jnp.allclose(out, ref, atol=5e-2, rtol=5e-2), float(jnp.max(jnp.abs(out - ref)))

    print("KERNEL_OK")
</pallas_src>

<mosaic_0001>
module attributes {stable_mosaic.version = 11 : i64} {
  func.func @_mlp_kernel(%arg0: i32, %arg1: memref<16x4xf32, #tpu.memory_space<vmem>>, %arg2: memref<4x128xf32, #tpu.memory_space<vmem>>, %arg3: memref<1x128xf32, #tpu.memory_space<vmem>>, %arg4: memref<128x256xbf16, #tpu.memory_space<vmem>>, %arg5: memref<1x256xf32, #tpu.memory_space<vmem>>, %arg6: memref<256x64xbf16, #tpu.memory_space<vmem>>, %arg7: memref<1x64xf32, #tpu.memory_space<vmem>>, %arg8: memref<64x8xbf16, #tpu.memory_space<vmem>>, %arg9: memref<1x8xf32, #tpu.memory_space<vmem>>, %arg10: memref<16x8xf32, #tpu.memory_space<vmem>>) attributes {dimension_semantics = [#tpu.dimension_semantics<parallel>], iteration_bounds = array<i64: 1>, scalar_prefetch = 0 : i64, scratch_operands = 0 : i64, tpu.core_type = #tpu.core_type<tc>, window_params = [{transform_indices = @transform_0, window_bounds = array<i64: 16, 4>}, {pipeline_mode = #tpu.pipeline_mode<synchronous>, transform_indices = @transform_1, window_bounds = array<i64: 4, 128>}, {pipeline_mode = #tpu.pipeline_mode<synchronous>, transform_indices = @transform_2, window_bounds = array<i64: 1, 128>}, {pipeline_mode = #tpu.pipeline_mode<synchronous>, transform_indices = @transform_3, window_bounds = array<i64: 128, 256>}, {pipeline_mode = #tpu.pipeline_mode<synchronous>, transform_indices = @transform_4, window_bounds = array<i64: 1, 256>}, {pipeline_mode = #tpu.pipeline_mode<synchronous>, transform_indices = @transform_5, window_bounds = array<i64: 256, 64>}, {pipeline_mode = #tpu.pipeline_mode<synchronous>, transform_indices = @transform_6, window_bounds = array<i64: 1, 64>}, {pipeline_mode = #tpu.pipeline_mode<synchronous>, transform_indices = @transform_7, window_bounds = array<i64: 64, 8>}, {pipeline_mode = #tpu.pipeline_mode<synchronous>, transform_indices = @transform_8, window_bounds = array<i64: 1, 8>}, {transform_indices = @transform_9, window_bounds = array<i64: 16, 8>}]} {
    %c0 = arith.constant 0 : index
    %c0_0 = arith.constant 0 : index
    %0 = vector.load %arg1[%c0, %c0_0] : memref<16x4xf32, #tpu.memory_space<vmem>>, vector<16x4xf32>
    %c0_1 = arith.constant 0 : index
    %c0_2 = arith.constant 0 : index
    %1 = vector.load %arg2[%c0_1, %c0_2] : memref<4x128xf32, #tpu.memory_space<vmem>>, vector<4x128xf32>
    %cst = arith.constant dense<0.000000e+00> : vector<16x128xf32>
    %2 = tpu.matmul %0, %1, %cst {dimension_numbers = #tpu.dot_dimension_numbers<[1], [0], [0], [1], [0, 0, 1, 1], [], []>} : vector<16x4xf32>, vector<4x128xf32>, vector<16x128xf32> -> vector<16x128xf32>
    %c0_3 = arith.constant 0 : index
    %c0_4 = arith.constant 0 : index
    %3 = vector.load %arg3[%c0_3, %c0_4] : memref<1x128xf32, #tpu.memory_space<vmem>>, vector<1x128xf32>
    %4 = vector.broadcast %3 : vector<1x128xf32> to vector<16x128xf32>
    %5 = arith.addf %2, %4 : vector<16x128xf32>
    %cst_5 = arith.constant 0.000000e+00 : f32
    %6 = vector.broadcast %cst_5 : f32 to vector<16x128xf32>
    %7 = arith.maximumf %5, %6 : vector<16x128xf32>
    %8 = arith.truncf %7 : vector<16x128xf32> to vector<16x128xbf16>
    %c0_6 = arith.constant 0 : index
    %c0_7 = arith.constant 0 : index
    %9 = vector.load %arg4[%c0_6, %c0_7] : memref<128x256xbf16, #tpu.memory_space<vmem>>, vector<128x256xbf16>
    %cst_8 = arith.constant dense<0.000000e+00> : vector<16x256xf32>
    %10 = tpu.matmul %8, %9, %cst_8 {dimension_numbers = #tpu.dot_dimension_numbers<[1], [0], [0], [1], [0, 0, 1, 1], [], []>} : vector<16x128xbf16>, vector<128x256xbf16>, vector<16x256xf32> -> vector<16x256xf32>
    %c0_9 = arith.constant 0 : index
    %c0_10 = arith.constant 0 : index
    %11 = vector.load %arg5[%c0_9, %c0_10] : memref<1x256xf32, #tpu.memory_space<vmem>>, vector<1x256xf32>
    %12 = vector.broadcast %11 : vector<1x256xf32> to vector<16x256xf32>
    %13 = arith.addf %10, %12 : vector<16x256xf32>
    %cst_11 = arith.constant 0.000000e+00 : f32
    %14 = vector.broadcast %cst_11 : f32 to vector<16x256xf32>
    %15 = arith.maximumf %13, %14 : vector<16x256xf32>
    %16 = arith.truncf %15 : vector<16x256xf32> to vector<16x256xbf16>
    %c0_12 = arith.constant 0 : index
    %c0_13 = arith.constant 0 : index
    %17 = vector.load %arg6[%c0_12, %c0_13] : memref<256x64xbf16, #tpu.memory_space<vmem>>, vector<256x64xbf16>
    %cst_14 = arith.constant dense<0.000000e+00> : vector<16x64xf32>
    %18 = tpu.matmul %16, %17, %cst_14 {dimension_numbers = #tpu.dot_dimension_numbers<[1], [0], [0], [1], [0, 0, 1, 1], [], []>} : vector<16x256xbf16>, vector<256x64xbf16>, vector<16x64xf32> -> vector<16x64xf32>
    %c0_15 = arith.constant 0 : index
    %c0_16 = arith.constant 0 : index
    %19 = vector.load %arg7[%c0_15, %c0_16] : memref<1x64xf32, #tpu.memory_space<vmem>>, vector<1x64xf32>
    %20 = vector.broadcast %19 : vector<1x64xf32> to vector<16x64xf32>
    %21 = arith.addf %18, %20 : vector<16x64xf32>
    %cst_17 = arith.constant 0.000000e+00 : f32
    %22 = vector.broadcast %cst_17 : f32 to vector<16x64xf32>
    %23 = arith.maximumf %21, %22 : vector<16x64xf32>
    %24 = arith.truncf %23 : vector<16x64xf32> to vector<16x64xbf16>
    %c0_18 = arith.constant 0 : index
    %c0_19 = arith.constant 0 : index
    %25 = vector.load %arg8[%c0_18, %c0_19] : memref<64x8xbf16, #tpu.memory_space<vmem>>, vector<64x8xbf16>
    %cst_20 = arith.constant dense<0.000000e+00> : vector<16x8xf32>
    %26 = tpu.matmul %24, %25, %cst_20 {dimension_numbers = #tpu.dot_dimension_numbers<[1], [0], [0], [1], [0, 0, 1, 1], [], []>} : vector<16x64xbf16>, vector<64x8xbf16>, vector<16x8xf32> -> vector<16x8xf32>
    %c0_21 = arith.constant 0 : index
    %c0_22 = arith.constant 0 : index
    %27 = vector.load %arg9[%c0_21, %c0_22] : memref<1x8xf32, #tpu.memory_space<vmem>>, vector<1x8xf32>
    %28 = vector.broadcast %27 : vector<1x8xf32> to vector<16x8xf32>
    %29 = arith.addf %26, %28 : vector<16x8xf32>
    %c0_23 = arith.constant 0 : index
    %c0_24 = arith.constant 0 : index
    %30 = vector.load %arg10[%c0_23, %c0_24] : memref<16x8xf32, #tpu.memory_space<vmem>>, vector<16x8xf32>
    tpu.vector_store %arg10[%c0_23, %c0_24], %29 {strides = array<i32>} : memref<16x8xf32, #tpu.memory_space<vmem>>, vector<16x8xf32>,
    return
  }
  func.func @transform_0(%arg0: i32) -> (i32, i32) {
    %c0_i32 = arith.constant 0 : i32
    %c0_i32_0 = arith.constant 0 : i32
    return %arg0, %c0_i32 : i32, i32
  }
  func.func @transform_1(%arg0: i32) -> (i32, i32) {
    %c0_i32 = arith.constant 0 : i32
    %c0_i32_0 = arith.constant 0 : i32
    %c0_i32_1 = arith.constant 0 : i32
    return %c0_i32, %c0_i32_0 : i32, i32
  }
  func.func @transform_2(%arg0: i32) -> (i32, i32) {
    %c0_i32 = arith.constant 0 : i32
    %c0_i32_0 = arith.constant 0 : i32
    %c0_i32_1 = arith.constant 0 : i32
    return %c0_i32, %c0_i32_0 : i32, i32
  }
  func.func @transform_3(%arg0: i32) -> (i32, i32) {
    %c0_i32 = arith.constant 0 : i32
    %c0_i32_0 = arith.constant 0 : i32
    %c0_i32_1 = arith.constant 0 : i32
    return %c0_i32, %c0_i32_0 : i32, i32
  }
  func.func @transform_4(%arg0: i32) -> (i32, i32) {
    %c0_i32 = arith.constant 0 : i32
    %c0_i32_0 = arith.constant 0 : i32
    %c0_i32_1 = arith.constant 0 : i32
    return %c0_i32, %c0_i32_0 : i32, i32
  }
  func.func @transform_5(%arg0: i32) -> (i32, i32) {
    %c0_i32 = arith.constant 0 : i32
    %c0_i32_0 = arith.constant 0 : i32
    %c0_i32_1 = arith.constant 0 : i32
    return %c0_i32, %c0_i32_0 : i32, i32
  }
  func.func @transform_6(%arg0: i32) -> (i32, i32) {
    %c0_i32 = arith.constant 0 : i32
    %c0_i32_0 = arith.constant 0 : i32
    %c0_i32_1 = arith.constant 0 : i32
    return %c0_i32, %c0_i32_0 : i32, i32
  }
  func.func @transform_7(%arg0: i32) -> (i32, i32) {
    %c0_i32 = arith.constant 0 : i32
    %c0_i32_0 = arith.constant 0 : i32
    %c0_i32_1 = arith.constant 0 : i32
    return %c0_i32, %c0_i32_0 : i32, i32
  }
  func.func @transform_8(%arg0: i32) -> (i32, i32) {
    %c0_i32 = arith.constant 0 : i32
    %c0_i32_0 = arith.constant 0 : i32
    %c0_i32_1 = arith.constant 0 : i32
    return %c0_i32, %c0_i32_0 : i32, i32
  }
  func.func @transform_9(%arg0: i32) -> (i32, i32) {
    %c0_i32 = arith.constant 0 : i32
    %c0_i32_0 = arith.constant 0 : i32
    return %arg0, %c0_i32 : i32, i32
  }
}

</mosaic_0001>

<bundles_post_ra>
// kernel: tpu_custom_call.1
= control target key start
LH: loop header
LB: loop body
LE: loop exit
PB: predicated region body
PF: predicated region fallthrough
CT: control target
= control target key end

     0   :  { %vm47_vm0 = vcmask 1043456   ;;  %vm40_vm1 = vcmask 31744   ;;  %vm412_vm2 = vcmask 523264   ;;  %vm430_vm3 = vcmask 64512   ;;  %s859_s1 = inlined_call_operand.vmem [shape: f32[4,128], index: 1, kind: input, shape index: {}]   ;;  %s860_s0 = inlined_call_operand.vmem [shape: f32[16,4], index: 0, kind: input, shape index: {}]   ;;  %s861_s3 = inlined_call_operand.vmem [shape: bf16[128,256], index: 3, kind: input, shape index: {}]   ;;  %s862_s2 = inlined_call_operand.vmem [shape: f32[1,128], index: 2, kind: input, shape index: {}]   ;;  %s863_s5 = inlined_call_operand.vmem [shape: bf16[256,64], index: 5, kind: input, shape index: {}]   ;;  %s864_s6 = inlined_call_operand.vmem [shape: f32[1,64], index: 6, kind: input, shape index: {}]   ;;  %s865_s4 = inlined_call_operand.vmem [shape: f32[1,256], index: 4, kind: input, shape index: {}]   ;;  %s866_s8 = inlined_call_operand.vmem [shape: f32[1,8], index: 8, kind: input, shape index: {}]   ;;  %s867_s7 = inlined_call_operand.vmem [shape: bf16[64,8], index: 7, kind: input, shape index: {}]   ;;  %s868_s9 = inlined_call_operand.vmem [shape: f32[16,8], index: 9, kind: output, shape index: {}]  }
   0x1   :  { %v35_v0 = vld [vmem:[%s859_s1] sm:$0xf]  ;;  %v498_v2 = vld [vmem:[%s861_s3 + $0x70] sm:$0xf]  ;;  %v600_v3 = vld [vmem:[%s861_s3 + $0x74] sm:$0xf0] }
   0x2   :  { %v33_v1 = vld [vmem:[%s860_s0] sm:$0xff]  ;;  %437 = vmatpush.msk.msra.mxu0 %vm47_vm0, %v35_v0  ;;  %v599_v4 = vld [vmem:[%s861_s3 + $0x74] sm:$0xf]  ;;  %v499_v5 = vor.u32 %v600_v3, %v498_v2  ;;  %v500_v6 = vld [vmem:[%s861_s3 + $0x78] sm:$0xf0] }
   0x3   :  { %438 = vmatmul.msk.f32.vlgmr.msra.gmra.mxu0 %vm40_vm1, %v33_v1  ;;  %v490_v7 = vld [vmem:[%s861_s3 + $0x60] sm:$0xf]  ;;  %v598_v8 = vld [vmem:[%s861_s3 + $0x64] sm:$0xf0]  ;;  %v503_v9 = vor.u32 %v599_v4, %v500_v6  ;;  %v597_v10 = vld [vmem:[%s861_s3 + $0x64] sm:$0xf] }
   0x4   :  { %v492_v11 = vld [vmem:[%s861_s3 + $0x68] sm:$0xf0]  ;;  %179 = vmatpush.bf16.msra.mxu1 %v499_v5  ;;  %v491_v12 = vor.u32 %v598_v8, %v490_v7  ;;  %v482_v14 = vld [vmem:[%s861_s3 + $0x50] sm:$0xf]  ;;  %v596_v15 = vld [vmem:[%s861_s3 + $0x54] sm:$0xf0] }
   0x5   :  { %193 = vmatpush.bf16.msra.mxu2 %v503_v9  ;;  %v495_v13 = vor.u32 %v597_v10, %v492_v11  ;;  %v595_v16 = vld [vmem:[%s861_s3 + $0x54] sm:$0xf]  ;;  %v484_v17 = vld [vmem:[%s861_s3 + $0x58] sm:$0xf0]  ;;  %v34_v18 = vld [vmem:[%s860_s0 + $0x8] sm:$0xff]  ;;  %v483_v19 = vor.u32 %v596_v15, %v482_v14 }
   0x6   :  { %v487_v20 = vor.u32 %v595_v16, %v484_v17  ;;  %v474_v21 = vld [vmem:[%s861_s3 + $0x40] sm:$0xf]  ;;  %v594_v22 = vld [vmem:[%s861_s3 + $0x44] sm:$0xf0]  ;;  %v593_v23 = vld [vmem:[%s861_s3 + $0x44] sm:$0xf] }
   0x7   :  { %v476_v24 = vld [vmem:[%s861_s3 + $0x48] sm:$0xf0]  ;;  %v475_v25 = vor.u32 %v594_v22, %v474_v21  ;;  %v466_v27 = vld [vmem:[%s861_s3 + $0x30] sm:$0xf]  ;;  %v592_v28 = vld [vmem:[%s861_s3 + $0x34] sm:$0xf0] }
   0x8   :  { %180 = vmatpush.bf16.msra.mxu1 %v491_v12  ;;  %v479_v26 = vor.u32 %v593_v23, %v476_v24  ;;  %v591_v29 = vld [vmem:[%s861_s3 + $0x34] sm:$0xf]  ;;  %v467_v30 = vor.u32 %v592_v28, %v466_v27  ;;  %v468_v31 = vld [vmem:[%s861_s3 + $0x38] sm:$0xf0]  ;;  %v458_v33 = vld [vmem:[%s861_s3 + $0x20] sm:$0xf] }
   0x9   :  { %194 = vmatpush.bf16.msra.mxu2 %v495_v13  ;;  %v471_v32 = vor.u32 %v591_v29, %v468_v31  ;;  %v590_v34 = vld [vmem:[%s861_s3 + $0x24] sm:$0xf0]  ;;  %v589_v35 = vld [vmem:[%s861_s3 + $0x24] sm:$0xf]  ;;  %v460_v37 = vld [vmem:[%s861_s3 + $0x28] sm:$0xf0] }
   0xa   :  { %v459_v36 = vor.u32 %v590_v34, %v458_v33  ;;  %v463_v38 = vor.u32 %v589_v35, %v460_v37  ;;  %v450_v39 = vld [vmem:[%s861_s3 + $0x10] sm:$0xf]  ;;  %v588_v40 = vld [vmem:[%s861_s3 + $0x14] sm:$0xf0]  ;;  %v587_v41 = vld [vmem:[%s861_s3 + $0x14] sm:$0xf] }
   0xb   :  { %439 = vmatmul.msk.f32.gmra.mxu0 %vm40_vm1, %v34_v18  ;;  %v451_v42 = vor.u32 %v588_v40, %v450_v39  ;;  %v452_v43 = vld [vmem:[%s861_s3 + $0x18] sm:$0xf0]  ;;  %v442_v45 = vld [vmem:[%s861_s3] sm:$0xf]  ;;  %v586_v46 = vld [vmem:[%s861_s3 + $0x4] sm:$0xf0] }
   0xc   :  { %181 = vmatpush.bf16.msra.mxu1 %v483_v19  ;;  %v455_v44 = vor.u32 %v587_v41, %v452_v43  ;;  %v585_v47 = vld [vmem:[%s861_s3 + $0x4] sm:$0xf]  ;;  %v443_v48 = vor.u32 %v586_v46, %v442_v45  ;;  %v444_v49 = vld [vmem:[%s861_s3 + $0x8] sm:$0xf0]  ;;  %v608_v51 = vld [vmem:[%s863_s5 + $0x38] sm:$0xff] }
   0xd   :  { %195 = vmatpush.bf16.msra.mxu2 %v487_v20  ;;  %v447_v50 = vor.u32 %v585_v47, %v444_v49  ;;  %v616_v52 = vld [vmem:[%s863_s5 + $0x78] sm:$0xff]  ;;  %345 = vmatpush.bf16.msra.mxu3 %v608_v51  ;;  %v607_v53 = vld [vmem:[%s863_s5 + $0x30] sm:$0xff]  ;;  %v606_v55 = vld [vmem:[%s863_s5 + $0x28] sm:$0xff] }
   0xe   :  { %359 = vmatpush.bf16.msrb.mxu0 %v616_v52  ;;  %v615_v54 = vld [vmem:[%s863_s5 + $0x70] sm:$0xff]  ;;  %v614_v56 = vld [vmem:[%s863_s5 + $0x68] sm:$0xff]  ;;  %v605_v57 = vld [vmem:[%s863_s5 + $0x20] sm:$0xff] }
   0xf   :  { %v621_v59 = vld [vmem:[%s862_s2] ss:$0 sm:$0xff]  ;;  %v604_v2 = vld [vmem:[%s863_s5 + $0x18] sm:$0xff]  ;;  %v603_v4 = vld [vmem:[%s863_s5 + $0x10] sm:$0xff] }
  0x10   :  { %182 = vmatpush.bf16.msra.mxu1 %v475_v25  ;;  %v613_v3 = vld [vmem:[%s863_s5 + $0x60] sm:$0xff]  ;;  %v612_v5 = vld [vmem:[%s863_s5 + $0x58] sm:$0xff]  ;;  %v602_v6 = vld [vmem:[%s863_s5 + $0x8] sm:$0xff] }
  0x11   :  { %196 = vmatpush.bf16.msra.mxu2 %v479_v26  ;;  %346 = vmatpush.bf16.msra.mxu3 %v607_v53  ;;  %v611_v7 = vld [vmem:[%s863_s5 + $0x50] sm:$0xff]  ;;  %v601_v8 = vld [vmem:[%s863_s5] sm:$0xff]  ;;  %v610_v9 = vld [vmem:[%s863_s5 + $0x48] sm:$0xff] }
  0x12   :  { %360 = vmatpush.bf16.msrb.mxu0 %v615_v54  ;;  %v609_v10 = vld [vmem:[%s863_s5 + $0x40] sm:$0xff]  ;;  %v620_v28 = vld [vmem:[%s867_s7 + $0x18] sm:$0xff]  ;;  %v619_v29 = vld [vmem:[%s867_s7 + $0x10] sm:$0xff] }
  0x13   :  { %v93_v11 = vld [vmem:[%s865_s4] sm:$0x3] }
  0x14   :  { %183 = vmatpush.bf16.msra.mxu1 %v467_v30  ;;  %v95_v13 = vperm.slane %v93_v11, 0  ;;  %v96_v17 = vperm.slane %v93_v11, 1  ;;  %v618_v30 = vld [vmem:[%s867_s7 + $0x8] sm:$0xff]  ;;  %v617_v31 = vld [vmem:[%s867_s7] sm:$0xff] }
  0x15   :  { %197 = vmatpush.bf16.msra.mxu2 %v471_v32  ;;  %347 = vmatpush.bf16.msra.mxu3 %v606_v55  ;;  %v622_v34 = vld [vmem:[%s864_s6] ss:$0 sm:$0xff] }
  0x16   :  { %361 = vmatpush.bf16.msrb.mxu0 %v614_v56 }
  0x18   :  { %184 = vmatpush.bf16.msra.mxu1 %v459_v36 }
  0x19   :  { %198 = vmatpush.bf16.msra.mxu2 %v463_v38  ;;  %348 = vmatpush.bf16.msra.mxu3 %v605_v57 }
  0x1a   :  { %362 = vmatpush.bf16.msrb.mxu0 %v613_v3 }
  0x1c   :  { %185 = vmatpush.bf16.msra.mxu1 %v451_v42 }
  0x1d   :  { %199 = vmatpush.bf16.msra.mxu2 %v455_v44  ;;  %349 = vmatpush.bf16.msra.mxu3 %v604_v2  ;;  %v623_v44 = vld [vmem:[%s866_s8] ss:$0 sm:$0xff] }
  0x1e   :  { %363 = vmatpush.bf16.msrb.mxu0 %v612_v5 }
  0x20   :  { %186 = vmatpush.bf16.msra.mxu1 %v443_v48 }
  0x21   :  { %200 = vmatpush.bf16.msra.mxu2 %v447_v50  ;;  %350 = vmatpush.bf16.msra.mxu3 %v603_v4 }
  0x22   :  { %364 = vmatpush.bf16.msrb.mxu0 %v611_v7 }
  0x24   :  { %420 = vmatpush.bf16.msrb.mxu1 %v620_v28 }
  0x25   :  { %351 = vmatpush.bf16.msra.mxu3 %v602_v6 }
  0x26   :  { %365 = vmatpush.bf16.msrb.mxu0 %v610_v9 }
  0x28   :  { %421 = vmatpush.bf16.msrb.mxu1 %v619_v29 }
  0x29   :  { %352 = vmatpush.bf16.msra.mxu3 %v601_v8 }
  0x2a   :  { %366 = vmatpush.bf16.msrb.mxu0 %v609_v10 }
  0x2c   :  { %422 = vmatpush.bf16.msrb.mxu1 %v618_v30 }
  0x30   :  { %423 = vmatpush.bf16.msrb.mxu1 %v617_v31 }
  0x80   :  { %v68_v58 = vpop.f32.mrf.mxu0 }
  0x81   :  { %v69_v60 = vadd.f32 %v621_v59, %v68_v58 }
  0x83   :  { %v74_v63 = vmax.f32 %v69_v60, 0.0 }
  0x88   :  { %v71_v61 = vpop.f32.mrf.mxu0 }
  0x89   :  { %v72_v62 = vadd.f32 %v621_v59, %v71_v61 }
  0x8b   :  { %v75_v0 = vmax.f32 %v72_v62, 0.0 }
  0x8d   :  { %v76_v1 = vpack.c.bf16 %v75_v0, %v74_v63 }
  0x8f   :  { %187 = vmatmul.bf16.vlgmr.msra.gmra.mxu1 %v76_v1  ;;  %201 = vmatmul.bf16.vlgmr.msra.gmra.mxu2 %v76_v1 }
 0x10c   :  { %v188_v12 = vpop.f32.mrf.mxu1 }
 0x10d   :  { %v189_v15 = vadd.f32 %v188_v12, %v95_v13 }
 0x10f   :  { %v207_v19 = vmax.f32 %v189_v15, 0.0 }
 0x112   :  { %v202_v14 = vpop.f32.mrf.mxu2 }
 0x113   :  { %v203_v21 = vadd.f32 %v202_v14, %v96_v17 }
 0x114   :  { %v190_v16 = vpop.f32.mrf.mxu1 }
 0x115   :  { %v191_v18 = vadd.f32 %v190_v16, %v95_v13  ;;  %v208_v25 = vmax.f32 %v203_v21, 0.0 }
 0x117   :  { %v209_v20 = vmax.f32 %v191_v18, 0.0 }
 0x119   :  { %v211_v22 = vpack.c.bf16 %v209_v20, %v207_v19 }
 0x11a   :  { %v204_v23 = vpop.f32.mrf.mxu2 }
 0x11b   :  { %v205_v24 = vadd.f32 %v204_v23, %v96_v17  ;;  %353 = vmatmul.bf16.vlgmr.msra.gmra.mxu3 %v211_v22 }
 0x11d   :  { %v210_v26 = vmax.f32 %v205_v24, 0.0 }
 0x11f   :  { %v212_v27 = vpack.c.bf16 %v210_v26, %v208_v25 }
 0x121   :  { %367 = vmatmul.bf16.vlgmr.msrb.gmra.mxu0 %v212_v27 }
 0x19e   :  { %v354_v32 = vpop.f32.mrf.mxu3  ;;  %v368_v33 = vpop.f32.mrf.mxu0 }
 0x19f   :  { %v355_v35 = vadd.f32 %v622_v34, %v354_v32 }
 0x1a1   :  { %v369_v37 = vadd.f32 %v368_v33, %v355_v35 }
 0x1a3   :  { %v373_v41 = vmax.f32 %v369_v37, 0.0 }
 0x1a6   :  { %v356_v36 = vpop.f32.mrf.mxu3  ;;  %v370_v39 = vpop.f32.mrf.mxu0 }
 0x1a7   :  { %v357_v38 = vadd.f32 %v622_v34, %v356_v36 }
 0x1a9   :  { %v371_v40 = vadd.f32 %v370_v39, %v357_v38 }
 0x1ab   :  { %v374_v42 = vmax.f32 %v371_v40, 0.0 }
 0x1ad   :  { %v375_v43 = vpack.c.bf16 %v374_v42, %v373_v41 }
 0x1af   :  { %584 = vmatmul.msk.bf16.vlgmr.msrb.gmra.mxu1 %vm412_vm2, %v375_v43 }
 0x22c   :  { %v425_v45 = vpop.f32.mrf.mxu1 }
 0x22d   :  { %v426_v46 = vadd.f32 %v623_v44, %v425_v45 }
 0x22f   :  { %431 = vst.msk [vmem:[%s868_s9] sm:$0xff] %vm430_vm3, %v426_v46 }
 0x234   :  { %v427_v47 = vpop.f32.mrf.mxu1 }
 0x235   :  { %v428_v48 = vadd.f32 %v623_v44, %v427_v47 }
 0x237   :  { %432 = vst.msk [vmem:[%s868_s9 + $0x8] sm:$0xff] %vm430_vm3, %v428_v48 }

</bundles_post_ra>
